<compile_context>
chip_gen: v7x
topology: tpu7x:2x2x1
jax: 0.10.0
libtpu: 0.0.40
codegen_flags: <defaults>
</compile_context>

<pallas_src>
import jax
import jax.numpy as jnp
from jax.experimental import pallas as pl
from jax.experimental.pallas import tpu as pltpu


def _round_up(x, m):
    return ((x + m - 1) // m) * m


def manager_scan_kernel(f_ref, h0_ref, c0_ref,
                        w_ih_ref, w_hh_ref, b_gate_ref,
                        w_fc_ref, b_fc_ref,
                        out_ref,
                        h_sc, c_sc):
    """One grid step == one recurrent Manager step.

    f_ref    : (1, B, G)   current f_t block (streamed over the time grid)
    h0/c0    : (B, H)      initial state (only read at t == 0)
    weights  : resident in VMEM for the whole call (constant block index)
    out_ref  : (1, B, PAD) lane-dense slab: [goal | h_new | c_new | zero pad]
    h_sc/c_sc: (B, H)      VMEM scratch carrying the recurrence across steps
    """
    t = pl.program_id(0)

    @pl.when(t == 0)
    def _init():
        h_sc[...] = h0_ref[...]
        c_sc[...] = c0_ref[...]

    f_t = f_ref[0]                       # (B, G)
    h_t = h_sc[...]                      # (B, H)
    c_t = c_sc[...]                      # (B, H)
    B = c_t.shape[0]
    H = c_t.shape[-1]
    G = f_t.shape[-1]

    # LSTMCell gate pre-activations, gate order i, f, g, o.  Two MXU pushes;
    # the elementwise adds hide under the MXU slot.
    gates = (jnp.dot(f_t, w_ih_ref[...], preferred_element_type=jnp.float32)
             + jnp.dot(h_t, w_hh_ref[...], preferred_element_type=jnp.float32)
             + b_gate_ref[...])

    i_g = jax.nn.sigmoid(gates[:, 0 * H:1 * H])
    f_g = jax.nn.sigmoid(gates[:, 1 * H:2 * H])
    g_g = jnp.tanh(gates[:, 2 * H:3 * H])
    o_g = jax.nn.sigmoid(gates[:, 3 * H:4 * H])

    c_new = f_g * c_t + i_g * g_g
    h_new = o_g * jnp.tanh(c_new)

    # fc: (B, H) @ (H, G) + (1, G)
    sub_goal = (jnp.dot(h_new, w_fc_ref[...], preferred_element_type=jnp.float32)
                + b_fc_ref[...])

    # torch.renorm(sub_goal, p=2, dim=0, maxnorm=1.0): rows with L2 norm > 1
    # are rescaled to unit norm.  Exact rsqrt of the squared norm (EUP slot);
    # differs from torch's 1/(norm + 1e-7) by < 1e-7 relative.
    sumsq = jnp.sum(sub_goal * sub_goal, axis=-1, keepdims=True)
    inv = jax.lax.rsqrt(jnp.maximum(sumsq, 1e-30))
    scale = jnp.where(sumsq > 1.0, inv, jnp.ones_like(inv))
    goal = sub_goal * scale

    # Carry the recurrence entirely in VMEM (never leaves the chip between steps).
    h_sc[...] = h_new
    c_sc[...] = c_new

    # Lane-dense output slab: sliced stores, no concatenate.
    out_ref[0, :, 0:G] = goal
    out_ref[0, :, G:G + H] = h_new
    out_ref[0, :, G + H:G + 2 * H] = c_new
    pad = out_ref.shape[-1] - (G + 2 * H)
    if pad > 0:                                   # static Python condition
        out_ref[0, :, G + 2 * H:] = jnp.zeros((B, pad), jnp.float32)


def manager_scan(f_seq, h0, c0, params):
    """Runs T Manager steps in ONE pallas_call.

    f_seq : (T, B, G) per-step LSTM inputs
    h0/c0 : (B, H)    initial hidden / cell state
    Returns (goal_seq (T, B, G), h_T (B, H), c_T (B, H)).
    """
    T, B, G = f_seq.shape
    H = h0.shape[-1]
    PAD = _round_up(G + 2 * H, 128)               # lane-dense output width

    w_ih_t = params["w_ih_t"]     # (G, 4H)
    w_hh_t = params["w_hh_t"]     # (H, 4H)
    b_gate = params["b_gate"]     # (1, 4H)
    w_fc_t = params["w_fc_t"]     # (H, G)
    b_fc = params["b_fc"]         # (1, G)

    def resident(arr):
        # Whole-array block, constant block index -> stays in VMEM for all T steps.
        nd = arr.ndim
        return pl.BlockSpec(arr.shape, lambda t, _nd=nd: (0,) * _nd)

    flops = T * (2 * B * G * 4 * H + 2 * B * H * 4 * H + 2 * B * H * G)
    transcendentals = T * B * (4 * H + H + 1)     # gate sigmoids/tanh, tanh(c), rsqrt
    bytes_accessed = 4 * (f_seq.size + h0.size + c0.size
                          + w_ih_t.size + w_hh_t.size + b_gate.size
                          + w_fc_t.size + b_fc.size + T * B * PAD)

    slab = pl.pallas_call(
        manager_scan_kernel,
        out_shape=jax.ShapeDtypeStruct((T, B, PAD), jnp.float32),
        grid_spec=pltpu.PrefetchScalarGridSpec(
            num_scalar_prefetch=0,
            grid=(T,),
            in_specs=[
                pl.BlockSpec((1, B, G), lambda t: (t, 0, 0)),   # f_t stream
                resident(h0), resident(c0),
                resident(w_ih_t), resident(w_hh_t), resident(b_gate),
                resident(w_fc_t), resident(b_fc),
            ],
            out_specs=pl.BlockSpec((1, B, PAD), lambda t: (t, 0, 0)),
            scratch_shapes=[pltpu.VMEM((B, H), jnp.float32),     # h carry
                            pltpu.VMEM((B, H), jnp.float32)],    # c carry
        ),
        compiler_params=pltpu.CompilerParams(
            dimension_semantics=("arbitrary",)),                 # sequential recurrence
        cost_estimate=pl.CostEstimate(flops=flops,
                                      transcendentals=transcendentals,
                                      bytes_accessed=bytes_accessed),
    )(f_seq, h0, c0, w_ih_t, w_hh_t, b_gate, w_fc_t, b_fc)

    goal_seq = slab[:, :, :G]
    h_T = slab[-1, :, G:G + H]
    c_T = slab[-1, :, G + H:G + 2 * H]
    return goal_seq, h_T, c_T


def manager_forward(f_t, h_m_t, c_m_t, params):
    """Single recurrent step == Manager.forward(f_t, h_m_t, c_m_t)."""
    goal_seq, h_new, c_new = manager_scan(f_t[None], h_m_t, c_m_t, params)
    return goal_seq[0], h_new, c_new


def manager_reference(f_t, h_m_t, c_m_t, params):
    """Pure-JAX reference matching PyTorch semantics (for tolerance check)."""
    H = h_m_t.shape[-1]
    gates = f_t @ params["w_ih_t"] + h_m_t @ params["w_hh_t"] + params["b_gate"]
    i_g = jax.nn.sigmoid(gates[:, 0 * H:1 * H])
    f_g = jax.nn.sigmoid(gates[:, 1 * H:2 * H])
    g_g = jnp.tanh(gates[:, 2 * H:3 * H])
    o_g = jax.nn.sigmoid(gates[:, 3 * H:4 * H])
    c_new = f_g * c_m_t + i_g * g_g
    h_new = o_g * jnp.tanh(c_new)
    sg = h_new @ params["w_fc_t"] + params["b_fc"]
    norm = jnp.linalg.norm(sg, axis=-1, keepdims=True)
    scale = jnp.where(norm > 1.0, 1.0 / (norm + 1e-7), jnp.ones_like(norm))
    return sg * scale, h_new, c_new


def manager_reference_scan(f_seq, h0, c0, params):
    def step(carry, f_t):
        h, c = carry
        g, h2, c2 = manager_reference(f_t, h, c, params)
        return (h2, c2), g
    (h_T, c_T), goals = jax.lax.scan(step, (h0, c0), f_seq)
    return goals, h_T, c_T


def init_params(key, hidden_dim, goal_out_size):
    """Deterministic synthetic parameters (std=0.1 normals, matching _init_params).

    PyTorch LSTMCell weights are (4H, in) / (4H, H); stored transposed so the
    kernel does (B, G) @ (G, 4H) and (B, H) @ (H, 4H) directly.
    goal_init (truncated normal) is a module parameter not used in forward(),
    so it is omitted.
    """
    ks = jax.random.split(key, 6)
    H, G = hidden_dim, goal_out_size
    w_ih = 0.1 * jax.random.normal(ks[0], (4 * H, G), jnp.float32)
    w_hh = 0.1 * jax.random.normal(ks[1], (4 * H, H), jnp.float32)
    b_ih = 0.1 * jax.random.normal(ks[2], (4 * H,), jnp.float32)
    b_hh = 0.1 * jax.random.normal(ks[3], (4 * H,), jnp.float32)
    w_fc = 0.1 * jax.random.normal(ks[4], (G, H), jnp.float32)
    b_fc = 0.1 * jax.random.normal(ks[5], (G,), jnp.float32)
    return {
        "w_ih_t": w_ih.T,                      # (G, 4H)
        "w_hh_t": w_hh.T,                      # (H, 4H)
        "b_gate": (b_ih + b_hh)[None, :],      # (1, 4H)
        "w_fc_t": w_fc.T,                      # (H, G)
        "b_fc": b_fc[None, :],                 # (1, G)
    }


if __name__ == "__main__":
    batch_size = 4
    hidden_dim = 32
    goal_out_size = 16
    seq_len = 8

    key = jax.random.PRNGKey(0)
    k_f, k_h, k_c, k_p, k_seq = jax.random.split(key, 5)

    f_t = jax.random.normal(k_f, (batch_size, goal_out_size), jnp.float32)
    h_m_t = jax.random.normal(k_h, (batch_size, hidden_dim), jnp.float32)
    c_m_t = jax.random.normal(k_c, (batch_size, hidden_dim), jnp.float32)
    f_seq = jax.random.normal(k_seq, (seq_len, batch_size, goal_out_size),
                              jnp.float32)

    params = init_params(k_p, hidden_dim, goal_out_size)

    # ---- single step: exactly Manager.forward(f_t, h_m_t, c_m_t) ----
    sub_goal, h_tp1, c_tp1 = manager_forward(f_t, h_m_t, c_m_t, params)
    jax.block_until_ready((sub_goal, h_tp1, c_tp1))

    assert sub_goal.shape == (batch_size, goal_out_size)
    assert h_tp1.shape == (batch_size, hidden_dim)
    assert c_tp1.shape == (batch_size, hidden_dim)
    # renorm guarantee: every row L2 norm <= 1.0 (+ tiny tolerance)
    assert bool(jnp.all(jnp.linalg.norm(sub_goal, axis=-1) <= 1.0 + 1e-5))

    ref_goal, ref_h, ref_c = manager_reference(f_t, h_m_t, c_m_t, params)
    assert bool(jnp.allclose(sub_goal, ref_goal, rtol=1e-5, atol=1e-5))
    assert bool(jnp.allclose(h_tp1, ref_h, rtol=1e-5, atol=1e-5))
    assert bool(jnp.allclose(c_tp1, ref_c, rtol=1e-5, atol=1e-5))

    # ---- fused T-step recurrence in ONE pallas_call (the main perf lever) ----
    goal_seq, h_T, c_T = manager_scan(f_seq, h_m_t, c_m_t, params)
    jax.block_until_ready((goal_seq, h_T, c_T))

    ref_goals, ref_hT, ref_cT = manager_reference_scan(f_seq, h_m_t, c_m_t, params)
    assert goal_seq.shape == (seq_len, batch_size, goal_out_size)
    assert bool(jnp.all(jnp.linalg.norm(goal_seq, axis=-1) <= 1.0 + 1e-5))
    assert bool(jnp.allclose(goal_seq, ref_goals, rtol=1e-4, atol=1e-4))
    assert bool(jnp.allclose(h_T, ref_hT, rtol=1e-4, atol=1e-4))
    assert bool(jnp.allclose(c_T, ref_cT, rtol=1e-4, atol=1e-4))

    print("KERNEL_OK")
</pallas_src>

<mosaic_0001>
module attributes {stable_mosaic.version = 11 : i64} {
  func.func @manager_scan_kernel(%arg0: i32, %arg1: memref<1x4x16xf32, #tpu.memory_space<vmem>>, %arg2: memref<4x32xf32, #tpu.memory_space<vmem>>, %arg3: memref<4x32xf32, #tpu.memory_space<vmem>>, %arg4: memref<16x128xf32, #tpu.memory_space<vmem>>, %arg5: memref<32x128xf32, #tpu.memory_space<vmem>>, %arg6: memref<1x128xf32, #tpu.memory_space<vmem>>, %arg7: memref<32x16xf32, #tpu.memory_space<vmem>>, %arg8: memref<1x16xf32, #tpu.memory_space<vmem>>, %arg9: memref<1x4x128xf32, #tpu.memory_space<vmem>>, %arg10: memref<4x32xf32, #tpu.memory_space<vmem>>, %arg11: memref<4x32xf32, #tpu.memory_space<vmem>>) attributes {dimension_semantics = [#tpu.dimension_semantics<arbitrary>], iteration_bounds = array<i64: 1>, scalar_prefetch = 0 : i64, scratch_operands = 2 : i64, tpu.core_type = #tpu.core_type<tc>, window_params = [{transform_indices = @transform_0, window_bounds = array<i64: 1, 4, 16>}, {pipeline_mode = #tpu.pipeline_mode<synchronous>, transform_indices = @transform_1, window_bounds = array<i64: 4, 32>}, {pipeline_mode = #tpu.pipeline_mode<synchronous>, transform_indices = @transform_2, window_bounds = array<i64: 4, 32>}, {pipeline_mode = #tpu.pipeline_mode<synchronous>, transform_indices = @transform_3, window_bounds = array<i64: 16, 128>}, {pipeline_mode = #tpu.pipeline_mode<synchronous>, transform_indices = @transform_4, window_bounds = array<i64: 32, 128>}, {pipeline_mode = #tpu.pipeline_mode<synchronous>, transform_indices = @transform_5, window_bounds = array<i64: 1, 128>}, {pipeline_mode = #tpu.pipeline_mode<synchronous>, transform_indices = @transform_6, window_bounds = array<i64: 32, 16>}, {pipeline_mode = #tpu.pipeline_mode<synchronous>, transform_indices = @transform_7, window_bounds = array<i64: 1, 16>}, {transform_indices = @transform_8, window_bounds = array<i64: 1, 4, 128>}]} {
    %c0_i32 = arith.constant 0 : i32
    %0 = arith.cmpi eq, %arg0, %c0_i32 : i32
    %1 = arith.extui %0 : i1 to i32
    %c0_i32_0 = arith.constant 0 : i32
    %2 = arith.cmpi ne, %1, %c0_i32_0 : i32
    scf.if %2 {
      %c0_40 = arith.constant 0 : index
      %c0_41 = arith.constant 0 : index
      %72 = vector.load %arg2[%c0_40, %c0_41] : memref<4x32xf32, #tpu.memory_space<vmem>>, vector<4x32xf32>
      %c0_42 = arith.constant 0 : index
      %c0_43 = arith.constant 0 : index
      %73 = vector.load %arg10[%c0_42, %c0_43] : memref<4x32xf32, #tpu.memory_space<vmem>>, vector<4x32xf32>
      tpu.vector_store %arg10[%c0_42, %c0_43], %72 {strides = array<i32>} : memref<4x32xf32, #tpu.memory_space<vmem>>, vector<4x32xf32>,
      %c0_44 = arith.constant 0 : index
      %c0_45 = arith.constant 0 : index
      %74 = vector.load %arg3[%c0_44, %c0_45] : memref<4x32xf32, #tpu.memory_space<vmem>>, vector<4x32xf32>
      %c0_46 = arith.constant 0 : index
      %c0_47 = arith.constant 0 : index
      %75 = vector.load %arg11[%c0_46, %c0_47] : memref<4x32xf32, #tpu.memory_space<vmem>>, vector<4x32xf32>
      tpu.vector_store %arg11[%c0_46, %c0_47], %74 {strides = array<i32>} : memref<4x32xf32, #tpu.memory_space<vmem>>, vector<4x32xf32>,
    } else {
    }
    %c0 = arith.constant 0 : index
    %c0_1 = arith.constant 0 : index
    %c0_2 = arith.constant 0 : index
    %3 = vector.load %arg1[%c0, %c0_1, %c0_2] : memref<1x4x16xf32, #tpu.memory_space<vmem>>, vector<1x4x16xf32>
    %4 = vector.shape_cast %3 : vector<1x4x16xf32> to vector<4x16xf32>
    %c0_3 = arith.constant 0 : index
    %c0_4 = arith.constant 0 : index
    %5 = vector.load %arg10[%c0_3, %c0_4] : memref<4x32xf32, #tpu.memory_space<vmem>>, vector<4x32xf32>
    %c0_5 = arith.constant 0 : index
    %c0_6 = arith.constant 0 : index
    %6 = vector.load %arg11[%c0_5, %c0_6] : memref<4x32xf32, #tpu.memory_space<vmem>>, vector<4x32xf32>
    %c0_7 = arith.constant 0 : index
    %c0_8 = arith.constant 0 : index
    %7 = vector.load %arg4[%c0_7, %c0_8] : memref<16x128xf32, #tpu.memory_space<vmem>>, vector<16x128xf32>
    %cst = arith.constant dense<0.000000e+00> : vector<4x128xf32>
    %8 = tpu.matmul %4, %7, %cst {dimension_numbers = #tpu.dot_dimension_numbers<[1], [0], [0], [1], [0, 0, 1, 1], [], []>} : vector<4x16xf32>, vector<16x128xf32>, vector<4x128xf32> -> vector<4x128xf32>
    %c0_9 = arith.constant 0 : index
    %c0_10 = arith.constant 0 : index
    %9 = vector.load %arg5[%c0_9, %c0_10] : memref<32x128xf32, #tpu.memory_space<vmem>>, vector<32x128xf32>
    %cst_11 = arith.constant dense<0.000000e+00> : vector<4x128xf32>
    %10 = tpu.matmul %5, %9, %cst_11 {dimension_numbers = #tpu.dot_dimension_numbers<[1], [0], [0], [1], [0, 0, 1, 1], [], []>} : vector<4x32xf32>, vector<32x128xf32>, vector<4x128xf32> -> vector<4x128xf32>
    %11 = arith.addf %8, %10 : vector<4x128xf32>
    %c0_12 = arith.constant 0 : index
    %c0_13 = arith.constant 0 : index
    %12 = vector.load %arg6[%c0_12, %c0_13] : memref<1x128xf32, #tpu.memory_space<vmem>>, vector<1x128xf32>
    %13 = vector.broadcast %12 : vector<1x128xf32> to vector<4x128xf32>
    %14 = arith.addf %11, %13 : vector<4x128xf32>
    %15 = vector.extract_strided_slice %14 {offsets = [0, 0], sizes = [4, 32], strides = [1, 1]} : vector<4x128xf32> to vector<4x32xf32>
    %16 = arith.negf %15 : vector<4x32xf32>
    %17 = math.exp %16 : vector<4x32xf32>
    %cst_14 = arith.constant 1.000000e+00 : f32
    %18 = vector.broadcast %cst_14 : f32 to vector<4x32xf32>
    %19 = arith.addf %18, %17 : vector<4x32xf32>
    %20 = arith.divf %18, %19 : vector<4x32xf32>
    %21 = vector.extract_strided_slice %14 {offsets = [0, 32], sizes = [4, 32], strides = [1, 1]} : vector<4x128xf32> to vector<4x32xf32>
    %22 = arith.negf %21 : vector<4x32xf32>
    %23 = math.exp %22 : vector<4x32xf32>
    %cst_15 = arith.constant 1.000000e+00 : f32
    %24 = vector.broadcast %cst_15 : f32 to vector<4x32xf32>
    %25 = arith.addf %24, %23 : vector<4x32xf32>
    %26 = arith.divf %24, %25 : vector<4x32xf32>
    %27 = vector.extract_strided_slice %14 {offsets = [0, 64], sizes = [4, 32], strides = [1, 1]} : vector<4x128xf32> to vector<4x32xf32>
    %28 = math.tanh %27 : vector<4x32xf32>
    %29 = vector.extract_strided_slice %14 {offsets = [0, 96], sizes = [4, 32], strides = [1, 1]} : vector<4x128xf32> to vector<4x32xf32>
    %30 = arith.negf %29 : vector<4x32xf32>
    %31 = math.exp %30 : vector<4x32xf32>
    %cst_16 = arith.constant 1.000000e+00 : f32
    %32 = vector.broadcast %cst_16 : f32 to vector<4x32xf32>
    %33 = arith.addf %32, %31 : vector<4x32xf32>
    %34 = arith.divf %32, %33 : vector<4x32xf32>
    %35 = arith.mulf %26, %6 : vector<4x32xf32>
    %36 = arith.mulf %20, %28 : vector<4x32xf32>
    %37 = arith.addf %35, %36 : vector<4x32xf32>
    %38 = math.tanh %37 : vector<4x32xf32>
    %39 = arith.mulf %34, %38 : vector<4x32xf32>
    %c0_17 = arith.constant 0 : index
    %c0_18 = arith.constant 0 : index
    %40 = vector.load %arg7[%c0_17, %c0_18] : memref<32x16xf32, #tpu.memory_space<vmem>>, vector<32x16xf32>
    %cst_19 = arith.constant dense<0.000000e+00> : vector<4x16xf32>
    %41 = tpu.matmul %39, %40, %cst_19 {dimension_numbers = #tpu.dot_dimension_numbers<[1], [0], [0], [1], [0, 0, 1, 1], [], []>} : vector<4x32xf32>, vector<32x16xf32>, vector<4x16xf32> -> vector<4x16xf32>
    %c0_20 = arith.constant 0 : index
    %c0_21 = arith.constant 0 : index
    %42 = vector.load %arg8[%c0_20, %c0_21] : memref<1x16xf32, #tpu.memory_space<vmem>>, vector<1x16xf32>
    %43 = vector.broadcast %42 : vector<1x16xf32> to vector<4x16xf32>
    %44 = arith.addf %41, %43 : vector<4x16xf32>
    %45 = arith.mulf %44, %44 : vector<4x16xf32>
    %cst_22 = arith.constant dense<0.000000e+00> : vector<4xf32>
    %46 = vector.multi_reduction <add>, %45, %cst_22 [1] : vector<4x16xf32> to vector<4xf32>
    %47 = vector.shape_cast %46 : vector<4xf32> to vector<4x1xf32>
    %cst_23 = arith.constant 1.000000e-30 : f32
    %48 = vector.broadcast %cst_23 : f32 to vector<4x1xf32>
    %49 = arith.maximumf %47, %48 : vector<4x1xf32>
    %50 = math.rsqrt %49 : vector<4x1xf32>
    %cst_24 = arith.constant 1.000000e+00 : f32
    %51 = vector.broadcast %cst_24 : f32 to vector<4x1xf32>
    %52 = arith.cmpf ogt, %47, %51 : vector<4x1xf32>
    %cst_25 = arith.constant 1.000000e+00 : f32
    %53 = vector.broadcast %cst_25 : f32 to vector<4x1xf32>
    %54 = arith.select %52, %50, %53 : vector<4x1xi1>, vector<4x1xf32>
    %55 = vector.broadcast %54 : vector<4x1xf32> to vector<4x16xf32>
    %56 = arith.mulf %44, %55 : vector<4x16xf32>
    %c0_26 = arith.constant 0 : index
    %c0_27 = arith.constant 0 : index
    %57 = vector.load %arg10[%c0_26, %c0_27] : memref<4x32xf32, #tpu.memory_space<vmem>>, vector<4x32xf32>
    tpu.vector_store %arg10[%c0_26, %c0_27], %39 {strides = array<i32>} : memref<4x32xf32, #tpu.memory_space<vmem>>, vector<4x32xf32>,
    %c0_28 = arith.constant 0 : index
    %c0_29 = arith.constant 0 : index
    %58 = vector.load %arg11[%c0_28, %c0_29] : memref<4x32xf32, #tpu.memory_space<vmem>>, vector<4x32xf32>
    tpu.vector_store %arg11[%c0_28, %c0_29], %37 {strides = array<i32>} : memref<4x32xf32, #tpu.memory_space<vmem>>, vector<4x32xf32>,
    %c0_30 = arith.constant 0 : index
    %c0_31 = arith.constant 0 : index
    %c0_32 = arith.constant 0 : index
    %59 = vector.load %arg9[%c0_30, %c0_31, %c0_32] : memref<1x4x128xf32, #tpu.memory_space<vmem>>, vector<1x4x16xf32>
    %60 = vector.shape_cast %59 : vector<1x4x16xf32> to vector<4x16xf32>
    %61 = vector.shape_cast %56 : vector<4x16xf32> to vector<1x4x16xf32>
    tpu.vector_store %arg9[%c0_30, %c0_31, %c0_32], %61 {strides = array<i32>} : memref<1x4x128xf32, #tpu.memory_space<vmem>>, vector<1x4x16xf32>,
    %c0_33 = arith.constant 0 : index
    %c0_34 = arith.constant 0 : index
    %c16 = arith.constant 16 : index
    %62 = vector.load %arg9[%c0_33, %c0_34, %c16] : memref<1x4x128xf32, #tpu.memory_space<vmem>>, vector<1x4x32xf32>
    %63 = vector.shape_cast %62 : vector<1x4x32xf32> to vector<4x32xf32>
    %64 = vector.shape_cast %39 : vector<4x32xf32> to vector<1x4x32xf32>
    tpu.vector_store %arg9[%c0_33, %c0_34, %c16], %64 {strides = array<i32>} : memref<1x4x128xf32, #tpu.memory_space<vmem>>, vector<1x4x32xf32>,
    %c0_35 = arith.constant 0 : index
    %c0_36 = arith.constant 0 : index
    %c48 = arith.constant 48 : index
    %65 = vector.load %arg9[%c0_35, %c0_36, %c48] : memref<1x4x128xf32, #tpu.memory_space<vmem>>, vector<1x4x32xf32>
    %66 = vector.shape_cast %65 : vector<1x4x32xf32> to vector<4x32xf32>
    %67 = vector.shape_cast %37 : vector<4x32xf32> to vector<1x4x32xf32>
    tpu.vector_store %arg9[%c0_35, %c0_36, %c48], %67 {strides = array<i32>} : memref<1x4x128xf32, #tpu.memory_space<vmem>>, vector<1x4x32xf32>,
    %cst_37 = arith.constant 0.000000e+00 : f32
    %68 = vector.broadcast %cst_37 : f32 to vector<4x48xf32>
    %c0_38 = arith.constant 0 : index
    %c0_39 = arith.constant 0 : index
    %c80 = arith.constant 80 : index
    %69 = vector.load %arg9[%c0_38, %c0_39, %c80] : memref<1x4x128xf32, #tpu.memory_space<vmem>>, vector<1x4x48xf32>
    %70 = vector.shape_cast %69 : vector<1x4x48xf32> to vector<4x48xf32>
    %71 = vector.shape_cast %68 : vector<4x48xf32> to vector<1x4x48xf32>
    tpu.vector_store %arg9[%c0_38, %c0_39, %c80], %71 {strides = array<i32>} : memref<1x4x128xf32, #tpu.memory_space<vmem>>, vector<1x4x48xf32>,
    return
  }
  func.func @transform_0(%arg0: i32) -> (i32, i32, i32) {
    %c0_i32 = arith.constant 0 : i32
    %c0_i32_0 = arith.constant 0 : i32
    %c0_i32_1 = arith.constant 0 : i32
    return %arg0, %c0_i32, %c0_i32_0 : i32, i32, i32
  }
  func.func @transform_1(%arg0: i32) -> (i32, i32) {
    %c0_i32 = arith.constant 0 : i32
    %c0_i32_0 = arith.constant 0 : i32
    %c0_i32_1 = arith.constant 0 : i32
    return %c0_i32, %c0_i32_0 : i32, i32
  }
  func.func @transform_2(%arg0: i32) -> (i32, i32) {
    %c0_i32 = arith.constant 0 : i32
    %c0_i32_0 = arith.constant 0 : i32
    %c0_i32_1 = arith.constant 0 : i32
    return %c0_i32, %c0_i32_0 : i32, i32
  }
  func.func @transform_3(%arg0: i32) -> (i32, i32) {
    %c0_i32 = arith.constant 0 : i32
    %c0_i32_0 = arith.constant 0 : i32
    %c0_i32_1 = arith.constant 0 : i32
    return %c0_i32, %c0_i32_0 : i32, i32
  }
  func.func @transform_4(%arg0: i32) -> (i32, i32) {
    %c0_i32 = arith.constant 0 : i32
    %c0_i32_0 = arith.constant 0 : i32
    %c0_i32_1 = arith.constant 0 : i32
    return %c0_i32, %c0_i32_0 : i32, i32
  }
  func.func @transform_5(%arg0: i32) -> (i32, i32) {
    %c0_i32 = arith.constant 0 : i32
    %c0_i32_0 = arith.constant 0 : i32
    %c0_i32_1 = arith.constant 0 : i32
    return %c0_i32, %c0_i32_0 : i32, i32
  }
  func.func @transform_6(%arg0: i32) -> (i32, i32) {
    %c0_i32 = arith.constant 0 : i32
    %c0_i32_0 = arith.constant 0 : i32
    %c0_i32_1 = arith.constant 0 : i32
    return %c0_i32, %c0_i32_0 : i32, i32
  }
  func.func @transform_7(%arg0: i32) -> (i32, i32) {
    %c0_i32 = arith.constant 0 : i32
    %c0_i32_0 = arith.constant 0 : i32
    %c0_i32_1 = arith.constant 0 : i32
    return %c0_i32, %c0_i32_0 : i32, i32
  }
  func.func @transform_8(%arg0: i32) -> (i32, i32, i32) {
    %c0_i32 = arith.constant 0 : i32
    %c0_i32_0 = arith.constant 0 : i32
    %c0_i32_1 = arith.constant 0 : i32
    return %arg0, %c0_i32, %c0_i32_0 : i32, i32, i32
  }
}

</mosaic_0001>

<bundles_post_ra>
// kernel: tpu_custom_call.1
= control target key start
LH: loop header
LB: loop body
LE: loop exit
PB: predicated region body
PF: predicated region fallthrough
CT: control target
= control target key end

     0   :  { %13 = vsyncpa [#allocation5], 0  ;;  %s694_s0 = inlined_call_operand.vmem [shape: f32[1,4,16], index: 0, kind: input, shape index: {}]   ;;  %s695_s1 = inlined_call_operand.hbm [shape: f32[4,32], index: 1, kind: input, shape index: {}]   ;;  %s696_s2 = inlined_call_operand.hbm [shape: f32[4,32], index: 2, kind: input, shape index: {}]   ;;  %s697_s3 = inlined_call_operand.vmem [shape: f32[16,128], index: 3, kind: input, shape index: {}]   ;;  %s698_s4 = inlined_call_operand.vmem [shape: f32[32,128], index: 4, kind: input, shape index: {}]   ;;  %s699_s5 = inlined_call_operand.vmem [shape: f32[1,128], index: 5, kind: input, shape index: {}]   ;;  %s700_s6 = inlined_call_operand.vmem [shape: f32[32,16], index: 6, kind: input, shape index: {}]   ;;  %s701_s7 = inlined_call_operand.vmem [shape: f32[1,16], index: 7, kind: input, shape index: {}]   ;;  %s702_s8 = inlined_call_operand.hbm [shape: f32[1,4,128], index: 8, kind: output, shape index: {}]  }
   0x1   :  { %14 = vsyncpa [#allocation8], 0 }
   0x2   :  { %15 = vsyncpa [#allocation6], 0  ;;  %s545_s27 = smov [#allocation4]   ;;  %s546_s29 = smov [#allocation7]  }
   0x3   :  { %s24_s28 = sshll.u32 %s545_s27, 4  ;;  %s34_s30 = sshll.u32 %s546_s29, 4  ;;  %s25_s28 = int_to_ptr.vmem [resolvable:$true] %s24_s28  ;;  %s35_s30 = int_to_ptr.vmem [resolvable:$true] %s34_s30 }
   0x4   :  { %s473_s11 = scalar_lea.hbm %s695_s1, 64 }
   0x5   :  { %p474_p0 = scmp.ne.s32.totalorder %s695_s1, %s473_s11  ;;  %p477_p1 = scmp.lt.u32.totalorder %s473_s11, %s695_s1 }
   0x7   :  { %p479_p2 = pnand %p477_p1, %p474_p0 }
   0x9   :  { %482 = shalt.err (!%p479_p2)
}
   0xa   :  { %s483_s16 = scalar_lea.vmem %s25_s28, 64  ;;  %p488_p4 = scmp.lt.s32.totalorder %s25_s28, %s25_s28 }
   0xb   :  { %p484_p3 = scmp.ne.s32.totalorder %s25_s28, %s483_s16  ;;  %p489_p5 = scmp.lt.s32.totalorder %s483_s16, %s483_s16 }
   0xd   :  { %p490_p6 = por %p489_p5, %p488_p4 }
   0xf   :  { %p491_p7 = pnand %p490_p6, %p484_p3 }
  0x11   :  { %494 = shalt.err (!%p491_p7)
}
  0x12   :  { %27 = dma.hbm_to_vmem [thread:$0]  %s695_s1, 64, %s25_s28, [#allocation5]  }
  0x13   :  { %s495_s21 = scalar_lea.hbm %s696_s2, 64 }
  0x14   :  { %p496_p8 = scmp.ne.s32.totalorder %s696_s2, %s495_s21  ;;  %p499_p9 = scmp.lt.u32.totalorder %s495_s21, %s696_s2 }
  0x16   :  { %p501_p10 = pnand %p499_p9, %p496_p8 }
  0x18   :  { %504 = shalt.err (!%p501_p10)
}
  0x19   :  { %s505_s26 = scalar_lea.vmem %s35_s30, 64  ;;  %p510_p12 = scmp.lt.s32.totalorder %s35_s30, %s35_s30 }
  0x1a   :  { %p506_p11 = scmp.ne.s32.totalorder %s35_s30, %s505_s26  ;;  %p511_p13 = scmp.lt.s32.totalorder %s505_s26, %s505_s26 }
  0x1c   :  { %p512_p0 = por %p511_p13, %p510_p12 }
  0x1e   :  { %p513_p1 = pnand %p512_p0, %p506_p11 }
  0x20   :  { %516 = shalt.err (!%p513_p1)
}
  0x21   :  { %37 = dma.hbm_to_vmem [thread:$0]  %s696_s2, 64, %s35_s30, [#allocation8]  }
  0x22   :  { %539 = dma.done.wait [#allocation5], 64  }
  0x23   :  { %540 = vsyncadd [#allocation5], 4294967232 }
  0x24   :  { %541 = dma.done.wait [#allocation8], 64  }
  0x25   :  { %542 = vsyncadd [#allocation8], 4294967232  ;;  %v547_v0 = vmov 0.0|0.0   ;;  %vm548_vm0 = vmmov 0   ;;  %v549_v1 = vmov 0.0   ;;  %v68_v2 = vld [vmem:[%s698_s4] sm:$0xff] }
  0x26   :  { %437 = vmatprep.subr.bf16.mxu0 %v547_v0  ;;  %443 = vmatprep.subr.bf16.mxu1 %v547_v0  ;;  %v69_v3 = vld [vmem:[%s698_s4 + $0x8] sm:$0xff]  ;;  %v66_v4 = vld [vmem:[%s697_s3] sm:$0xff]  ;;  %vm59_vm1 = vcmask 257024   ;;  %v70_v7 = vld [vmem:[%s698_s4 + $0x10] sm:$0xff]  ;;  %vm146_vm2 = vcmask 130048   ;;  %vm72_vm3 = vcmask 261120  }
  0x27   :  { %423 = vmatprep.mubr.msk.f32.mxu1 %vm548_vm0, %v549_v1  ;;  %416 = vmatprep.mubr.msk.f32.mxu0 %vm548_vm0, %v549_v1  ;;  %v438_v5 = vpack.c.bf16 %v69_v3, %v68_v2  ;;  %v67_v6 = vld [vmem:[%s697_s3 + $0x8] sm:$0xff]  ;;  %v71_v8 = vld [vmem:[%s698_s4 + $0x18] sm:$0xff]  ;;  %v63_v12 = vld [vmem:[%s694_s0] sm:$0xf]  ;;  %s550_s4 = smov 64   ;;  %s551_s19 = smov 32  }
  0x28   :  { %v444_v9 = vpack.c.bf16 %v67_v6, %v66_v4  ;;  %v58_v10 = vld [vmem:[#allocation4] sm:$0xf]  ;;  %v441_v11 = vpack.c.bf16 %v71_v8, %v70_v7  ;;  %v61_v14 = vld [vmem:[#allocation7] sm:$0xf]  ;;  %v391_v18 = vld [vmem:[%s699_s5] ss:$0 sm:$0xff] }
  0x29   :  { %439 = vmatpush3.bf16.msra.mxu0 %v438_v5  ;;  %60 = vst.msk [vmem:[#allocation2] sm:$0xf] %vm59_vm1, %v58_v10  ;;  %62 = vst.msk [vmem:[#allocation3] sm:$0xf] %vm59_vm1, %v61_v14  ;;  %v256_v35 = vld [vmem:[%s700_s6] sm:$0xff]  ;;  %v257_v36 = vld [vmem:[%s700_s6 + $0x8] sm:$0xff] }
  0x2a   :  { %440 = vmatprep.subr.bf16.mxu0 %v547_v0  ;;  %445 = vmatpush3.bf16.msra.mxu1 %v444_v9  ;;  %v258_v37 = vld [vmem:[%s700_s6 + $0x10] sm:$0xff]  ;;  %v447_v38 = vpack.c.bf16 %v257_v36, %v256_v35  ;;  %v259_v39 = vld [vmem:[%s700_s6 + $0x18] sm:$0xff]  ;;  %s552_s1 = smov 48   ;;  %s553_s27 = smov 16   ;;  %v393_v47 = vld [vmem:[%s701_s7] ss:$0 sm:$0xff] }
  0x2b   :  { %446 = vmatprep.subr.bf16.mxu1 %v547_v0  ;;  %v450_v40 = vpack.c.bf16 %v259_v39, %v258_v37  ;;  %s554_s28 = smov 96   ;;  %vm343_vm4 = vcmask 125952   ;;  %vm364_vm6 = vcmask 388224   ;;  %s555_s2 = smov [#allocation9]   ;;  %vm369_vm7 = vcmask 650624  }
  0x2c   :  { %s379_s30 = sshll.u32 %s555_s2, 4  ;;  %vm371_vm8 = vcmask 1044096   ;;  %s380_s30 = int_to_ptr.vmem [resolvable:$true] %s379_s30 }
  0x2d   :  { %442 = vmatpush3.bf16.msra.mxu0 %v441_v11  ;;  %424 = vmatmul.mubr.msk.f32.vlgmr.msra.gmra.mrb[0].mxu1 %vm146_vm2, %v63_v12  ;;  %s517_s7 = scalar_lea.vmem %s380_s30, 64  ;;  %p522_p3 = scmp.lt.s32.totalorder %s380_s30, %s380_s30 }
  0x2e   :  { %434 = vmatprep.mubr.msk.f32.mxu1 %vm548_vm0, %v549_v1  ;;  %448 = vmatpush3.bf16.msra.mxu1 %v447_v38  ;;  %p518_p2 = scmp.ne.s32.totalorder %s380_s30, %s517_s7  ;;  %p523_p4 = scmp.lt.s32.totalorder %s517_s7, %s517_s7 }
  0x2f   :  { %449 = vmatprep.subr.bf16.mxu1 %v547_v0 }
  0x30   :  { %v64_v13 = vld [vmem:[#allocation2] sm:$0xf]  ;;  %v65_v23 = vld [vmem:[#allocation3] sm:$0xf]  ;;  %p524_p5 = por %p523_p4, %p522_p3 }
  0x31   :  { %417 = vmatmul.mubr.msk.f32.vlgmr.msra.gmra.mrb[0].mxu0 %vm72_vm3, %v64_v13 }
  0x32   :  { %451 = vmatpush3.bf16.msra.mxu1 %v450_v40  ;;  %p525_p6 = pnand %p524_p5, %p518_p2 }
 0x100   :  { %v216_v15 = vpop.f32.mrb[0].mxu1 }
 0x101   :  { %v425_v16 = vpop.f32.mrb[1].mxu1 }
 0x104   :  { %v142_v17 = vpop.f32.mrb[0].mxu0 }
 0x105   :  { %v217_v19 = vadd.f32 %v216_v15, %v142_v17  ;;  %v418_v20 = vpop.f32.mrb[1].mxu0 }
 0x107   :  { %v227_v21 = vadd.f32 %v391_v18, %v217_v19 }
 0x109   :  { %463 = vtanh.f32 %v227_v21  ;;  %v392_v24 = vmul.f32 -1.442695, %v227_v21 }
 0x10b   :  { %465 = vpow2.f32 %v392_v24 }
 0x113   :  { %v464_v22 = vpop.eup %463 }
 0x114   :  { %241 = vrot.lane.b32.xlu0 %v464_v22, %s550_s4 }
 0x115   :  { %v466_v25 = vpop.eup %465 }
 0x116   :  { %v231_v26 = vadd.f32 1.0, %v466_v25 }
 0x118   :  { %236 = vrot.lane.b32.xlu0 %v65_v23, %s551_s19  ;;  %467 = vrcp.f32 %v231_v26 }
 0x122   :  { %v468_v27 = vpop.eup %467 }
 0x186   :  { %v242_v28 = vpop.permute.xlu0 %241 }
 0x187   :  { %v244_v29 = vmul.f32 %v468_v27, %v242_v28 }
 0x189   :  { %246 = vrot.lane.b32.xlu1 %v244_v29, %s551_s19 }
 0x18a   :  { %v237_v30 = vpop.permute.xlu0 %236 }
 0x18b   :  { %v239_v31 = vmul.f32 %v468_v27, %v237_v30 }
 0x1fb   :  { %v247_v32 = vpop.permute.xlu1 %246 }
 0x1fc   :  { %v249_v33 = vadd.f32 %v247_v32, %v239_v31 }
 0x1fe   :  { %469 = vtanh.f32 %v249_v33 }
 0x208   :  { %v470_v34 = vpop.eup %469 }
 0x209   :  { %252 = vrot.lane.b32.xlu1 %v470_v34, %s550_s4 }
 0x27b   :  { %v253_v41 = vpop.permute.xlu1 %252 }
 0x27c   :  { %v255_v42 = vmul.f32 %v468_v27, %v253_v41 }
 0x27e   :  { %268 = vrot.lane.b32.xlu0 %v255_v42, %s551_s19 }
 0x282   :  { %361 = vrot.lane.b32.xlu0 %v255_v42, %s552_s1 }
 0x286   :  { %366 = vrot.lane.b32.xlu0 %v249_v33, %s553_s27 }
 0x28a   :  { %356 = vrot.lane.b32.xlu0 %v249_v33, %s554_s28 }
 0x2f0   :  { %v269_v43 = vpop.permute.xlu0 %268 }
 0x2f1   :  { %354 = vst.msk [vmem:[#allocation2] sm:$0xf] %vm59_vm1, %v269_v43  ;;  %435 = vmatmul.mubr.msk.f32.vlgmr.msra.gmra.mrb[2].mxu1 %vm72_vm3, %v269_v43 }
 0x2f4   :  { %v362_v44 = vpop.permute.xlu0 %361 }
 0x2f8   :  { %v367_v45 = vpop.permute.xlu0 %366 }
 0x2fc   :  { %v357_v46 = vpop.permute.xlu0 %356 }
 0x2fd   :  { %359 = vst.msk [vmem:[#allocation3] sm:$0xf] %vm59_vm1, %v357_v46 }
 0x3c4   :  { %v338_v48 = vpop.f32.mrb[2].mxu1 }
 0x3c5   :  { %v339_v49 = vadd.f32 %v393_v47, %v338_v48  ;;  %v436_v50 = vpop.f32.mrb[3].mxu1 }
 0x3c7   :  { %v342_v51 = vmul.f32 %v339_v49, %v339_v49 }
 0x3c9   :  { %v344_v52 = vsel %vm343_vm4, %v342_v51, 0.0 }
 0x3ca   :  { %345 = vadd.xlane.f32.xlu1 %v344_v52 }
 0x457   :  { %v346_v53 = vpop.xlane.xlu1 %345 }
 0x458   :  { %v347_v54 = vmax.f32 %v346_v53, 1e-30  ;;  %vm349_vm5 = vcmp.gt.f32.partialorder %v346_v53, 1.0 }
 0x45a   :  { %471 = vrsqrt.f32 %v347_v54 }
 0x464   :  { %v472_v55 = vpop.eup %471 }
 0x465   :  { %v350_v56 = vsel %vm349_vm5, %v472_v55, 1.0 }
 0x466   :  { %v351_v57 = vmul.f32 %v350_v56, %v339_v49 }
 0x468   :  { %360 = vst.msk [vmem:[#allocation9] sm:$0xf] %vm343_vm4, %v351_v57 }
 0x469   :  { %365 = vst.msk [vmem:[#allocation9] sm:$0xf] %vm364_vm6, %v362_v44 }
 0x46a   :  { %370 = vst.msk [vmem:[#allocation9] sm:$0xf] %vm369_vm7, %v367_v45 }
 0x46b   :  { %372 = vst.msk [vmem:[#allocation9] sm:$0xf] %vm371_vm8, %v549_v1 }
 0x46c   :  { %528 = shalt.err (!%p525_p6)
}
 0x46d   :  { %s529_s11 = scalar_lea.hbm %s702_s8, 64 }
 0x46e   :  { %p530_p7 = scmp.ne.s32.totalorder %s702_s8, %s529_s11  ;;  %p533_p8 = scmp.lt.u32.totalorder %s529_s11, %s702_s8 }
 0x470   :  { %p535_p9 = pnand %p533_p8, %p530_p7 }
 0x472   :  { %538 = shalt.err (!%p535_p9)
}
 0x473   :  { %382 = dma.vmem_to_hbm [thread:$0]  %s380_s30, 64, %s702_s8, [#allocation6]  }
 0x474   :  { %543 = dma.done.wait [#allocation6], 64  }
 0x475   :  { %544 = vsyncadd [#allocation6], 4294967232 }
 0x476   :  { %386 = vsyncpa [#allocation5], 1 }
 0x477   :  { %387 = vsyncpa [#allocation8], 1 }
 0x478   :  { %388 = vsyncpa [#allocation6], 1 }

</bundles_post_ra>
